<compile_context>
chip_gen: v6e
topology: v6e:2x2x1
jax: 0.10.0
libtpu: 0.0.40
codegen_flags: <defaults>
</compile_context>

<pallas_src>
import functools

import jax
import jax.numpy as jnp
import numpy as np
from jax.experimental import pallas as pl
from jax.experimental.pallas import tpu as pltpu


# ---------------------------------------------------------------------------
# Kernel
# ---------------------------------------------------------------------------
def basic_block_kernel(x_ref, w1_ref, w2_ref, b1_ref, b2_ref, out_ref,
                       *, H, W, C, Lb, Nb):
    """One grid step = Nb lane-packed images (each packs Lb original images).

    Shapes (L = Lb*W*C, LP = Lb*(W+2)*C, M = Nb*H, K = 3*LP):
      x_ref   : (Nb, H, L)   f32   activations (also the residual)
      w*_ref  : (K, L)       bf16  banded, BN-scale-folded conv weights
      b*_ref  : (1, L)       f32   folded BN bias
      out_ref : (Nb, H, L)   f32
    """
    WC = W * C
    WPC = (W + 2) * C
    L = Lb * WC
    LP = Lb * WPC
    M = Nb * H

    x = x_ref[...]                                       # (Nb, H, L) f32

    def pad_packed(a):
        # 1-pixel spatial zero pad per packed image, built as a value
        # (no padded VMEM scratch, no full-buffer clears).
        zc = jnp.zeros((Nb, H, C), a.dtype)              # left/right columns
        zr = jnp.zeros((Nb, 1, LP), a.dtype)             # top/bottom rows
        cols = []
        for l in range(Lb):
            cols += [zc, a[:, :, l * WC:(l + 1) * WC], zc]
        body = jnp.concatenate(cols, axis=2)             # (Nb, H, LP)
        return jnp.concatenate([zr, body, zr], axis=1)   # (Nb, H+2, LP)

    def conv3x3(a, w_ref):
        # One im2col matmul per conv: (M, 3*LP) x (3*LP, L).  The dw taps
        # live in the banded RHS; only the 3 dh row shifts are taken here.
        ap = pad_packed(a)                               # (Nb, H+2, LP) f32
        lhs = jnp.concatenate([ap[:, dh:dh + H, :] for dh in range(3)],
                              axis=2)                    # (Nb, H, 3*LP)
        lhs = lhs.reshape(M, 3 * LP).astype(w_ref.dtype)  # bf16 operand
        return jnp.dot(lhs, w_ref[...],
                       preferred_element_type=jnp.float32)   # (M, L) f32

    # ---- conv1 (BN1 scale folded into weights) -> +bias -> relu ----
    o1 = conv3x3(x, w1_ref)
    o1 = jnp.maximum(o1 + b1_ref[...], 0.0)

    # ---- conv2 (BN2 scale folded) -> +bias -> +residual -> relu ----
    o2 = conv3x3(o1.reshape(Nb, H, L), w2_ref)
    o2 = o2 + b2_ref[...] + x.reshape(M, L)
    out_ref[...] = jnp.maximum(o2, 0.0).reshape(Nb, H, L)


# ---------------------------------------------------------------------------
# Layout / parameter folding helpers (run once, outside the per-call path)
# ---------------------------------------------------------------------------
def _choose_lane_pack(N, W, C, max_pack=4):
    """Pack Lb batch images into the lane axis so lanes >= 128 and 128-aligned."""
    WC = W * C
    if WC % 128 == 0:
        return 1
    for lb in (2, 4):
        if lb <= max_pack and N % lb == 0 and (lb * WC) % 128 == 0:
            return lb
    return 1


def _choose_row_batch(Ns, H, max_rows=512):
    """Pick Nb (packed images per grid step) so M = Nb*H fills the MXU, while
    keeping >= 2 grid steps when possible (v7x has 2 TensorCores)."""
    best = 1
    for d in range(1, Ns + 1):
        if Ns % d:
            continue
        if d * H > max_rows:
            break
        if Ns // d >= 2 or Ns == 1:
            best = d
    return best


def _pack_lanes(x_nhwc, lane_pack):
    N, H, W, C = x_nhwc.shape
    Ns = N // lane_pack
    xf = x_nhwc.reshape(Ns, lane_pack, H, W * C)
    return jnp.transpose(xf, (0, 2, 1, 3)).reshape(Ns, H, lane_pack * W * C)


def _unpack_lanes(of, N, H, W, C, lane_pack):
    Ns = N // lane_pack
    o = of.reshape(Ns, H, lane_pack, W, C)
    return jnp.transpose(o, (0, 2, 1, 3, 4)).reshape(N, H, W, C)


def fold_bn(gamma, beta, running_mean, running_var, eps=1e-5):
    scale = gamma / jnp.sqrt(running_var + eps)
    bias = beta - running_mean * scale
    return scale, bias


def fold_conv_weights_banded(w_hwio, bn_scale, W, lane_pack,
                             out_dtype=jnp.bfloat16):
    """(3,3,Cin,Cout) HWIO weights -> banded (3*Lb*(W+2)*Cin, Lb*W*Cout) RHS.

    Row index = dh*(Lb*(W+2)*Cin) + l*((W+2)*Cin) + wp*Cin + ci
    Col index = l*(W*Cout) + w*Cout + co
    Entry     = bn_scale[co] * w[dh, wp-w, ci, co]   for 0 <= wp-w <= 2.
    """
    kh, kw, Cin, Cout = w_hwio.shape
    Wp = W + 2
    w = (w_hwio * bn_scale[None, None, None, :]).astype(jnp.float32)
    wcols = jnp.arange(W)
    blocks = []
    for dh in range(kh):
        b = jnp.zeros((Wp, Cin, W, Cout), jnp.float32)
        for dw in range(kw):
            b = b.at[wcols + dw, :, wcols, :].set(w[dh, dw])
        blocks.append(b.reshape(Wp * Cin, W * Cout))
    if lane_pack > 1:
        eye = jnp.eye(lane_pack, dtype=jnp.float32)
        blocks = [jnp.kron(eye, blk) for blk in blocks]
    return jnp.concatenate(blocks, axis=0).astype(out_dtype)


def fold_params(w1, w2, scale1, bias1, scale2, bias2, *, W, lane_pack):
    """Precompute banded bf16 conv weights (BN scale folded in) and per-lane
    BN biases once, outside the per-call path."""
    w1p = fold_conv_weights_banded(w1, scale1, W, lane_pack)
    w2p = fold_conv_weights_banded(w2, scale2, W, lane_pack)
    b1p = jnp.tile(bias1, lane_pack * W)[None, :].astype(jnp.float32)
    b2p = jnp.tile(bias2, lane_pack * W)[None, :].astype(jnp.float32)
    return w1p, w2p, b1p, b2p


# ---------------------------------------------------------------------------
# Forward wrapper
# ---------------------------------------------------------------------------
@functools.partial(jax.jit, static_argnames=("lane_pack",))
def basic_block_forward(x_nhwc, w1p, w2p, b1p, b2p, *, lane_pack):
    N, H, W, C = x_nhwc.shape
    Lb = lane_pack
    assert N % Lb == 0
    Ns = N // Lb
    L = Lb * W * C
    Kb = 3 * Lb * (W + 2) * C
    assert w1p.shape == (Kb, L) and w2p.shape == (Kb, L)
    assert b1p.shape == (1, L) and b2p.shape == (1, L)

    Nb = _choose_row_batch(Ns, H)
    grid = (Ns // Nb,)

    xf = _pack_lanes(x_nhwc, Lb)                       # (Ns, H, L)

    kernel = functools.partial(basic_block_kernel,
                               H=H, W=W, C=C, Lb=Lb, Nb=Nb)

    outf = pl.pallas_call(
        kernel,
        out_shape=jax.ShapeDtypeStruct((Ns, H, L), jnp.float32),
        grid_spec=pltpu.PrefetchScalarGridSpec(
            num_scalar_prefetch=0,
            grid=grid,
            in_specs=[
                pl.BlockSpec((Nb, H, L), lambda s: (s, 0, 0)),
                pl.BlockSpec((Kb, L), lambda s: (0, 0)),
                pl.BlockSpec((Kb, L), lambda s: (0, 0)),
                pl.BlockSpec((1, L), lambda s: (0, 0)),
                pl.BlockSpec((1, L), lambda s: (0, 0)),
            ],
            out_specs=pl.BlockSpec((Nb, H, L), lambda s: (s, 0, 0)),
        ),
        compiler_params=pltpu.CompilerParams(
            dimension_semantics=("parallel",)),
    )(xf, w1p, w2p, b1p, b2p)

    return _unpack_lanes(outf, N, H, W, C, Lb)


# ---------------------------------------------------------------------------
# References
# ---------------------------------------------------------------------------
def ref_forward_f32(x_nhwc, w1, w2, scale1, bias1, scale2, bias2):
    """Pure-f32 reference with the module's exact semantics."""
    dn = jax.lax.conv_dimension_numbers(x_nhwc.shape, w1.shape,
                                        ('NHWC', 'HWIO', 'NHWC'))
    o = jax.lax.conv_general_dilated(x_nhwc, w1, (1, 1), 'SAME',
                                     dimension_numbers=dn)
    o = jnp.maximum(o * scale1 + bias1, 0.0)
    o = jax.lax.conv_general_dilated(o, w2, (1, 1), 'SAME',
                                     dimension_numbers=dn)
    return jnp.maximum(o * scale2 + bias2 + x_nhwc, 0.0)


def ref_forward_bf16(x_nhwc, w1, w2, scale1, bias1, scale2, bias2):
    """Reference mirroring the kernel numerics: BN scale folded into the
    weights, conv operands rounded to bf16, f32 accumulation, and all
    elementwise math (bias / ReLU / residual) in f32."""
    def q(a):
        return a.astype(jnp.bfloat16).astype(jnp.float32)

    dn = jax.lax.conv_dimension_numbers(x_nhwc.shape, w1.shape,
                                        ('NHWC', 'HWIO', 'NHWC'))
    w1e = q(w1 * scale1[None, None, None, :])
    w2e = q(w2 * scale2[None, None, None, :])
    o = jax.lax.conv_general_dilated(q(x_nhwc), w1e, (1, 1), 'SAME',
                                     dimension_numbers=dn)
    o = jnp.maximum(o + bias1, 0.0)
    o = jax.lax.conv_general_dilated(q(o), w2e, (1, 1), 'SAME',
                                     dimension_numbers=dn)
    return jnp.maximum(o + bias2 + x_nhwc, 0.0)


# ---------------------------------------------------------------------------
if __name__ == "__main__":
    # Small shapes consistent with BasicBlock(inplanes=4, planes=4, stride=1).
    # TODO(synk): stride>1 / downsample branch not implemented (module default
    #             stride=1, downsample=None is what this kernel covers).
    N, C, H, W = 2, 4, 16, 16

    key = jax.random.PRNGKey(0)
    keys = jax.random.split(key, 11)

    # Input (PyTorch NCHW convention), converted to NHWC for the kernel side.
    x_nchw = jax.random.normal(keys[0], (N, C, H, W), dtype=jnp.float32)
    x_nhwc = jnp.transpose(x_nchw, (0, 2, 3, 1))

    # Conv weights: PyTorch (Cout, Cin, kh, kw) -> HWIO (kh, kw, Cin, Cout).
    w1_pt = 0.1 * jax.random.normal(keys[1], (C, C, 3, 3), dtype=jnp.float32)
    w2_pt = 0.1 * jax.random.normal(keys[2], (C, C, 3, 3), dtype=jnp.float32)
    w1 = jnp.transpose(w1_pt, (2, 3, 1, 0))
    w2 = jnp.transpose(w2_pt, (2, 3, 1, 0))

    # BatchNorm parameters (inference mode: folded running stats).
    gamma1 = 1.0 + 0.1 * jax.random.normal(keys[3], (C,), dtype=jnp.float32)
    beta1 = 0.1 * jax.random.normal(keys[4], (C,), dtype=jnp.float32)
    mean1 = 0.05 * jax.random.normal(keys[5], (C,), dtype=jnp.float32)
    var1 = jax.random.uniform(keys[6], (C,), minval=0.5, maxval=1.5,
                              dtype=jnp.float32)
    gamma2 = 1.0 + 0.1 * jax.random.normal(keys[7], (C,), dtype=jnp.float32)
    beta2 = 0.1 * jax.random.normal(keys[8], (C,), dtype=jnp.float32)
    mean2 = 0.05 * jax.random.normal(keys[9], (C,), dtype=jnp.float32)
    var2 = jax.random.uniform(keys[10], (C,), minval=0.5, maxval=1.5,
                              dtype=jnp.float32)

    scale1, bias1 = fold_bn(gamma1, beta1, mean1, var1)
    scale2, bias2 = fold_bn(gamma2, beta2, mean2, var2)

    # One-time parameter folding (outside the per-call path).
    lane_pack = _choose_lane_pack(N, W, C)          # -> 2 here (64 -> 128 lanes)
    w1p, w2p, b1p, b2p = fold_params(w1, w2, scale1, bias1, scale2, bias2,
                                     W=W, lane_pack=lane_pack)

    out = basic_block_forward(x_nhwc, w1p, w2p, b1p, b2p, lane_pack=lane_pack)
    out = jax.block_until_ready(out)

    # Tight check against a reference with identical (bf16-operand) numerics.
    ref_bf16 = ref_forward_bf16(x_nhwc, w1, w2, scale1, bias1, scale2, bias2)
    np.testing.assert_allclose(np.asarray(out), np.asarray(ref_bf16),
                               rtol=1e-2, atol=1e-2)

    # Loose check against the exact f32 module semantics (bf16 operand bound).
    ref_f32 = ref_forward_f32(x_nhwc, w1, w2, scale1, bias1, scale2, bias2)
    np.testing.assert_allclose(np.asarray(out), np.asarray(ref_f32),
                               rtol=5e-2, atol=5e-2)

    print("KERNEL_OK")
</pallas_src>

<mosaic_0001>
module attributes {stable_mosaic.version = 11 : i64} {
  func.func @basic_block_kernel(%arg0: i32, %arg1: memref<1x16x128xf32, #tpu.memory_space<vmem>>, %arg2: memref<432x128xbf16, #tpu.memory_space<vmem>>, %arg3: memref<432x128xbf16, #tpu.memory_space<vmem>>, %arg4: memref<1x128xf32, #tpu.memory_space<vmem>>, %arg5: memref<1x128xf32, #tpu.memory_space<vmem>>, %arg6: memref<1x16x128xf32, #tpu.memory_space<vmem>>) attributes {dimension_semantics = [#tpu.dimension_semantics<parallel>], iteration_bounds = array<i64: 1>, scalar_prefetch = 0 : i64, scratch_operands = 0 : i64, tpu.core_type = #tpu.core_type<tc>, window_params = [{transform_indices = @transform_0, window_bounds = array<i64: 1, 16, 128>}, {pipeline_mode = #tpu.pipeline_mode<synchronous>, transform_indices = @transform_1, window_bounds = array<i64: 432, 128>}, {pipeline_mode = #tpu.pipeline_mode<synchronous>, transform_indices = @transform_2, window_bounds = array<i64: 432, 128>}, {pipeline_mode = #tpu.pipeline_mode<synchronous>, transform_indices = @transform_3, window_bounds = array<i64: 1, 128>}, {pipeline_mode = #tpu.pipeline_mode<synchronous>, transform_indices = @transform_4, window_bounds = array<i64: 1, 128>}, {transform_indices = @transform_5, window_bounds = array<i64: 1, 16, 128>}]} {
    %c0 = arith.constant 0 : index
    %c0_0 = arith.constant 0 : index
    %c0_1 = arith.constant 0 : index
    %0 = vector.load %arg1[%c0, %c0_0, %c0_1] : memref<1x16x128xf32, #tpu.memory_space<vmem>>, vector<1x16x128xf32>
    %cst = arith.constant 0.000000e+00 : f32
    %1 = vector.broadcast %cst : f32 to vector<1x16x4xf32>
    %cst_2 = arith.constant 0.000000e+00 : f32
    %2 = vector.broadcast %cst_2 : f32 to vector<1x1x144xf32>
    %3 = vector.extract_strided_slice %0 {offsets = [0, 0, 0], sizes = [1, 16, 64], strides = [1, 1, 1]} : vector<1x16x128xf32> to vector<1x16x64xf32>
    %4 = vector.extract_strided_slice %0 {offsets = [0, 0, 64], sizes = [1, 16, 64], strides = [1, 1, 1]} : vector<1x16x128xf32> to vector<1x16x64xf32>
    %5 = tpu.concatenate %1, %3, %1, %1, %4, %1 in 2 : vector<1x16x4xf32>, vector<1x16x64xf32>, vector<1x16x4xf32>, vector<1x16x4xf32>, vector<1x16x64xf32>, vector<1x16x4xf32> -> vector<1x16x144xf32>
    %6 = tpu.concatenate %2, %5, %2 in 1 : vector<1x1x144xf32>, vector<1x16x144xf32>, vector<1x1x144xf32> -> vector<1x18x144xf32>
    %7 = vector.extract_strided_slice %6 {offsets = [0, 0, 0], sizes = [1, 16, 144], strides = [1, 1, 1]} : vector<1x18x144xf32> to vector<1x16x144xf32>
    %8 = vector.extract_strided_slice %6 {offsets = [0, 1, 0], sizes = [1, 16, 144], strides = [1, 1, 1]} : vector<1x18x144xf32> to vector<1x16x144xf32>
    %9 = vector.extract_strided_slice %6 {offsets = [0, 2, 0], sizes = [1, 16, 144], strides = [1, 1, 1]} : vector<1x18x144xf32> to vector<1x16x144xf32>
    %10 = tpu.concatenate %7, %8, %9 in 2 : vector<1x16x144xf32>, vector<1x16x144xf32>, vector<1x16x144xf32> -> vector<1x16x432xf32>
    %11 = vector.shape_cast %10 : vector<1x16x432xf32> to vector<16x432xf32>
    %12 = arith.truncf %11 : vector<16x432xf32> to vector<16x432xbf16>
    %c0_3 = arith.constant 0 : index
    %c0_4 = arith.constant 0 : index
    %13 = vector.load %arg2[%c0_3, %c0_4] : memref<432x128xbf16, #tpu.memory_space<vmem>>, vector<432x128xbf16>
    %cst_5 = arith.constant dense<0.000000e+00> : vector<16x128xf32>
    %14 = tpu.matmul %12, %13, %cst_5 {dimension_numbers = #tpu.dot_dimension_numbers<[1], [0], [0], [1], [0, 0, 1, 1], [], []>} : vector<16x432xbf16>, vector<432x128xbf16>, vector<16x128xf32> -> vector<16x128xf32>
    %c0_6 = arith.constant 0 : index
    %c0_7 = arith.constant 0 : index
    %15 = vector.load %arg4[%c0_6, %c0_7] : memref<1x128xf32, #tpu.memory_space<vmem>>, vector<1x128xf32>
    %16 = vector.broadcast %15 : vector<1x128xf32> to vector<16x128xf32>
    %17 = arith.addf %14, %16 : vector<16x128xf32>
    %cst_8 = arith.constant 0.000000e+00 : f32
    %18 = vector.broadcast %cst_8 : f32 to vector<16x128xf32>
    %19 = arith.maximumf %17, %18 : vector<16x128xf32>
    %20 = vector.shape_cast %19 : vector<16x128xf32> to vector<1x16x128xf32>
    %cst_9 = arith.constant 0.000000e+00 : f32
    %21 = vector.broadcast %cst_9 : f32 to vector<1x16x4xf32>
    %cst_10 = arith.constant 0.000000e+00 : f32
    %22 = vector.broadcast %cst_10 : f32 to vector<1x1x144xf32>
    %23 = vector.extract_strided_slice %20 {offsets = [0, 0, 0], sizes = [1, 16, 64], strides = [1, 1, 1]} : vector<1x16x128xf32> to vector<1x16x64xf32>
    %24 = vector.extract_strided_slice %20 {offsets = [0, 0, 64], sizes = [1, 16, 64], strides = [1, 1, 1]} : vector<1x16x128xf32> to vector<1x16x64xf32>
    %25 = tpu.concatenate %21, %23, %21, %21, %24, %21 in 2 : vector<1x16x4xf32>, vector<1x16x64xf32>, vector<1x16x4xf32>, vector<1x16x4xf32>, vector<1x16x64xf32>, vector<1x16x4xf32> -> vector<1x16x144xf32>
    %26 = tpu.concatenate %22, %25, %22 in 1 : vector<1x1x144xf32>, vector<1x16x144xf32>, vector<1x1x144xf32> -> vector<1x18x144xf32>
    %27 = vector.extract_strided_slice %26 {offsets = [0, 0, 0], sizes = [1, 16, 144], strides = [1, 1, 1]} : vector<1x18x144xf32> to vector<1x16x144xf32>
    %28 = vector.extract_strided_slice %26 {offsets = [0, 1, 0], sizes = [1, 16, 144], strides = [1, 1, 1]} : vector<1x18x144xf32> to vector<1x16x144xf32>
    %29 = vector.extract_strided_slice %26 {offsets = [0, 2, 0], sizes = [1, 16, 144], strides = [1, 1, 1]} : vector<1x18x144xf32> to vector<1x16x144xf32>
    %30 = tpu.concatenate %27, %28, %29 in 2 : vector<1x16x144xf32>, vector<1x16x144xf32>, vector<1x16x144xf32> -> vector<1x16x432xf32>
    %31 = vector.shape_cast %30 : vector<1x16x432xf32> to vector<16x432xf32>
    %32 = arith.truncf %31 : vector<16x432xf32> to vector<16x432xbf16>
    %c0_11 = arith.constant 0 : index
    %c0_12 = arith.constant 0 : index
    %33 = vector.load %arg3[%c0_11, %c0_12] : memref<432x128xbf16, #tpu.memory_space<vmem>>, vector<432x128xbf16>
    %cst_13 = arith.constant dense<0.000000e+00> : vector<16x128xf32>
    %34 = tpu.matmul %32, %33, %cst_13 {dimension_numbers = #tpu.dot_dimension_numbers<[1], [0], [0], [1], [0, 0, 1, 1], [], []>} : vector<16x432xbf16>, vector<432x128xbf16>, vector<16x128xf32> -> vector<16x128xf32>
    %c0_14 = arith.constant 0 : index
    %c0_15 = arith.constant 0 : index
    %35 = vector.load %arg5[%c0_14, %c0_15] : memref<1x128xf32, #tpu.memory_space<vmem>>, vector<1x128xf32>
    %36 = vector.broadcast %35 : vector<1x128xf32> to vector<16x128xf32>
    %37 = arith.addf %34, %36 : vector<16x128xf32>
    %38 = vector.shape_cast %0 : vector<1x16x128xf32> to vector<16x128xf32>
    %39 = arith.addf %37, %38 : vector<16x128xf32>
    %cst_16 = arith.constant 0.000000e+00 : f32
    %40 = vector.broadcast %cst_16 : f32 to vector<16x128xf32>
    %41 = arith.maximumf %39, %40 : vector<16x128xf32>
    %42 = vector.shape_cast %41 : vector<16x128xf32> to vector<1x16x128xf32>
    %c0_17 = arith.constant 0 : index
    %c0_18 = arith.constant 0 : index
    %c0_19 = arith.constant 0 : index
    %43 = vector.load %arg6[%c0_17, %c0_18, %c0_19] : memref<1x16x128xf32, #tpu.memory_space<vmem>>, vector<1x16x128xf32>
    tpu.vector_store %arg6[%c0_17, %c0_18, %c0_19], %42 {strides = array<i32>} : memref<1x16x128xf32, #tpu.memory_space<vmem>>, vector<1x16x128xf32>,
    return
  }
  func.func @transform_0(%arg0: i32) -> (i32, i32, i32) {
    %c0_i32 = arith.constant 0 : i32
    %c0_i32_0 = arith.constant 0 : i32
    %c0_i32_1 = arith.constant 0 : i32
    return %arg0, %c0_i32, %c0_i32_0 : i32, i32, i32
  }
  func.func @transform_1(%arg0: i32) -> (i32, i32) {
    %c0_i32 = arith.constant 0 : i32
    %c0_i32_0 = arith.constant 0 : i32
    %c0_i32_1 = arith.constant 0 : i32
    return %c0_i32, %c0_i32_0 : i32, i32
  }
  func.func @transform_2(%arg0: i32) -> (i32, i32) {
    %c0_i32 = arith.constant 0 : i32
    %c0_i32_0 = arith.constant 0 : i32
    %c0_i32_1 = arith.constant 0 : i32
    return %c0_i32, %c0_i32_0 : i32, i32
  }
  func.func @transform_3(%arg0: i32) -> (i32, i32) {
    %c0_i32 = arith.constant 0 : i32
    %c0_i32_0 = arith.constant 0 : i32
    %c0_i32_1 = arith.constant 0 : i32
    return %c0_i32, %c0_i32_0 : i32, i32
  }
  func.func @transform_4(%arg0: i32) -> (i32, i32) {
    %c0_i32 = arith.constant 0 : i32
    %c0_i32_0 = arith.constant 0 : i32
    %c0_i32_1 = arith.constant 0 : i32
    return %c0_i32, %c0_i32_0 : i32, i32
  }
  func.func @transform_5(%arg0: i32) -> (i32, i32, i32) {
    %c0_i32 = arith.constant 0 : i32
    %c0_i32_0 = arith.constant 0 : i32
    %c0_i32_1 = arith.constant 0 : i32
    return %arg0, %c0_i32, %c0_i32_0 : i32, i32, i32
  }
}

</mosaic_0001>

<bundles_post_ra>
// kernel: basic_block_forward.1
= control target key start
LH: loop header
LB: loop body
LE: loop exit
PB: predicated region body
PF: predicated region fallthrough
CT: control target
= control target key end

     0   :  { %10 = vsyncpa [#allocation3], 0  ;;  %s1139_s18 = smov [#allocation2]   ;;  %s1402_s0 = inlined_call_operand.vmem [shape: f32[1,16,128], index: 0, kind: input, shape index: {}]   ;;  %s1403_s1 = inlined_call_operand.vmem [shape: bf16[432,128], index: 1, kind: input, shape index: {}]   ;;  %s1404_s2 = inlined_call_operand.hbm [shape: bf16[432,128], index: 2, kind: input, shape index: {}]   ;;  %s1405_s3 = inlined_call_operand.vmem [shape: f32[1,128], index: 3, kind: input, shape index: {}]   ;;  %s1406_s4 = inlined_call_operand.vmem [shape: f32[1,128], index: 4, kind: input, shape index: {}]   ;;  %s1407_s5 = inlined_call_operand.vmem [shape: f32[1,16,128], index: 5, kind: output, shape index: {}]  }
   0x1   :  { %s20_s19 = sshll.u32 %s1139_s18, 4  ;;  %s21_s19 = int_to_ptr.vmem [resolvable:$true] %s20_s19 }
   0x2   :  { %s1125_s20 = scalar_lea.vmem %s21_s19, 3456  ;;  %p1130_p1 = scmp.lt.s32.totalorder %s21_s19, %s21_s19 }
   0x3   :  { %p1126_p0 = scmp.ne.s32.totalorder %s21_s19, %s1125_s20  ;;  %p1131_p2 = scmp.lt.s32.totalorder %s1125_s20, %s1125_s20 }
   0x5   :  { %p1132_p3 = por %p1131_p2, %p1130_p1 }
   0x7   :  { %p1133_p4 = pnand %p1132_p3, %p1126_p0 }
   0x9   :  { %1136 = shalt.err (!%p1133_p4)
}
   0xa   :  { %s1140_s21 = smov 64   ;;  %s1141_s22 = smov 4  }
   0xb   :  { %26 = dma.hbm_to_vmem [thread:$0]  %s1404_s2, 3456, %s21_s19, [#allocation3], %s1140_s21, %s1140_s21, %s1141_s22  }
   0xc   :  { %1137 = dma.done.wait [#allocation3], 3456  }
   0xd   :  { %1138 = vsyncadd [#allocation3], 4294963840  ;;  %v1184_v0 = vld [vmem:[%s1402_s0] sm:$0xff]  ;;  %v1189_v1 = vld [vmem:[%s1402_s0 + $0x8] sm:$0xff]  ;;  %s1142_s29 = smov 12   ;;  %v1143_v6 = vmov 0  }
   0xe   :  { %v1003_v2 = vpack.i.bf16 %v1189_v1, %v1184_v0  ;;  %v1063_v3 = vld [vmem:[%s1403_s1 + $0xb8] sm:$0xff]   ;;  %419 = vmatprep.subr.bf16.mxu1 %v1143_v6  ;;  %v1067_v7 = vld [vmem:[%s1403_s1 + $0x70] sm:$0xff]   ;;  %v1070_v10 = vld [vmem:[%s1403_s1 + $0x68] sm:$0xff]   ;;  %vm51_vm0 = vcmask 31744   ;;  %vm54_vm1 = vcmask 556032   ;;  %vm57_vm2 = vcmask 588800  }
   0xf   :  { %v1064_v4 = vld [vmem:[%s1403_s1 + $0x78] sm:$0xff]   ;;  %420 = vmatpush1.bf16.msra.mxu1 %v1063_v3  ;;  %v1066_v8 = vld [vmem:[%s1403_s1 + $0xb0] sm:$0xff]   ;;  %v1069_v11 = vld [vmem:[%s1403_s1 + $0xa8] sm:$0xff]   ;;  %vm60_vm3 = vcmask 621568   ;;  %vm63_vm4 = vcmask 97280   ;;  %vm70_vm5 = vcmask 1040384  }
  0x10   :  { %1004 = vrot.lane.b32.xlu0 %v1003_v2, %s1141_s22  ;;  %v1065_v5 = vld [vmem:[%s1403_s1 + $0x38] sm:$0xff]   ;;  %951 = vmatprep.subr.bf16.mxu0 %v1064_v4  ;;  %v1068_v9 = vld [vmem:[%s1403_s1 + $0x30] sm:$0xff]   ;;  %v1071_v12 = vld [vmem:[%s1403_s1 + $0x28] sm:$0xff]   ;;  %vm117_vm6 = vcmask 1045504   ;;  %vm91_vm7 = vcmask 1046528   ;;  %s1145_s8 = smov 16  }
  0x11   :  { %421 = vmatprep.subr.bf16.mxu1 %v1143_v6  ;;  %952 = vmatpush3.bf16.msra.mxu0 %v1065_v5  ;;  %v1072_v13 = vld [vmem:[%s1403_s1 + $0xa0] sm:$0xff]   ;;  %v1076_v16 = vld [vmem:[%s1403_s1 + $0x58] sm:$0xff]   ;;  %v1079_v19 = vld [vmem:[%s1403_s1 + $0x50] sm:$0xff]   ;;  %vm110_vm8 = vcmask 130048   ;;  %vm1146_vm10 = vmmov 1   ;;  %vm136_vm12 = vcmask 261120  }
  0x12   :  { %953 = vmatprep.subr.bf16.mxu0 %v1067_v7  ;;  %v1073_v14 = vld [vmem:[%s1403_s1 + $0x60] sm:$0xff]   ;;  %v1075_v17 = vld [vmem:[%s1403_s1 + $0x98] sm:$0xff]   ;;  %v1078_v20 = vld [vmem:[%s1403_s1 + $0x90] sm:$0xff]   ;;  %vm374_vm13 = vcmask 392192  }
  0x13   :  { %422 = vmatpush1.bf16.msra.mxu1 %v1066_v8  ;;  %v1074_v15 = vld [vmem:[%s1403_s1 + $0x20] sm:$0xff]   ;;  %v1077_v18 = vld [vmem:[%s1403_s1 + $0x18] sm:$0xff]   ;;  %v1080_v21 = vld [vmem:[%s1403_s1 + $0x10] sm:$0xff]  }
  0x14   :  { %1009 = vrot.lane.b32.xlu0 %v1003_v2, %s1142_s29  ;;  %423 = vmatprep.subr.bf16.mxu1 %v1143_v6  ;;  %v1082_v22 = vld [vmem:[%s1403_s1 + $0x48] sm:$0xff]   ;;  %v1084_v25 = vld [vmem:[%s1403_s1 + $0x80] sm:$0xff]   ;;  %v1087_v40 = vld [vmem:[%s1403_s1 + $0xd0] sm:$0xff]  }
  0x15   :  { %954 = vmatpush3.bf16.msra.mxu0 %v1068_v9  ;;  %v1081_v23 = vld [vmem:[%s1403_s1 + $0x88] sm:$0xff]   ;;  %v1085_v38 = vld [vmem:[%s1403_s1 + $0x40] sm:$0xff]   ;;  %vm913_vm9 = vmneg %vm70_vm5 }
  0x16   :  { %955 = vmatprep.subr.bf16.mxu0 %v1070_v10  ;;  %v1083_v24 = vld [vmem:[%s1403_s1 + $0x8] sm:$0xff]   ;;  %v1086_v39 = vld [vmem:[%s1403_s1] sm:$0xff]   ;;  %vm1324_vm11 = vmpackc.low %vm1146_vm10, %vm913_vm9 }
  0x17   :  { %424 = vmatpush1.bf16.msra.mxu1 %v1069_v11  ;;  %v1088_v56 = vld [vmem:[%s1403_s1 + $0xc8] sm:$0xff]   ;;  %v1089_v3 = vld [vmem:[%s1403_s1 + $0xc0] sm:$0xff]   ;;  %s1144_s1 = smov 32  }
  0x18   :  { %425 = vmatprep.subr.bf16.mxu1 %v1143_v6 }
  0x19   :  { %956 = vmatpush3.bf16.msra.mxu0 %v1071_v12 }
  0x1a   :  { %957 = vmatprep.subr.bf16.mxu0 %v1073_v14 }
  0x1b   :  { %426 = vmatpush1.bf16.msra.mxu1 %v1072_v13 }
  0x1c   :  { %427 = vmatprep.subr.bf16.mxu1 %v1143_v6 }
  0x1d   :  { %958 = vmatpush3.bf16.msra.mxu0 %v1074_v15 }
  0x1e   :  { %959 = vmatprep.subr.bf16.mxu0 %v1076_v16 }
  0x1f   :  { %428 = vmatpush1.bf16.msra.mxu1 %v1075_v17 }
  0x20   :  { %429 = vmatprep.subr.bf16.mxu1 %v1143_v6 }
  0x21   :  { %960 = vmatpush3.bf16.msra.mxu0 %v1077_v18 }
  0x22   :  { %961 = vmatprep.subr.bf16.mxu0 %v1079_v19 }
  0x23   :  { %430 = vmatpush1.bf16.msra.mxu1 %v1078_v20 }
  0x24   :  { %431 = vmatprep.subr.bf16.mxu1 %v1143_v6 }
  0x25   :  { %962 = vmatpush3.bf16.msra.mxu0 %v1080_v21 }
  0x26   :  { %963 = vmatprep.subr.bf16.mxu0 %v1082_v22 }
  0x27   :  { %432 = vmatpush1.bf16.msra.mxu1 %v1081_v23 }
  0x28   :  { %433 = vmatprep.subr.bf16.mxu1 %v1143_v6 }
  0x29   :  { %964 = vmatpush3.bf16.msra.mxu0 %v1083_v24 }
  0x2a   :  { %965 = vmatprep.subr.bf16.mxu0 %v1085_v38 }
  0x2b   :  { %434 = vmatpush1.bf16.msra.mxu1 %v1084_v25 }
  0x2c   :  { %445 = vmatprep.subr.bf16.mxu1 %v1143_v6 }
  0x2d   :  { %966 = vmatpush3.bf16.msra.mxu0 %v1086_v39 }
  0x2f   :  { %446 = vmatpush2.bf16.msra.mxu1 %v1087_v40 }
  0x30   :  { %447 = vmatprep.subr.bf16.mxu1 %v1143_v6 }
  0x33   :  { %448 = vmatpush2.bf16.msra.mxu1 %v1088_v56 }
  0x34   :  { %449 = vmatprep.subr.bf16.mxu1 %v1143_v6 }
  0x37   :  { %450 = vmatpush2.bf16.msra.mxu1 %v1089_v3  ;;  %v1093_v3 = vld [vmem:[#allocation2 + $0x38] sm:$0xff]  }
  0x38   :  { %833 = vmatprep.subr.bf16.mxu1 %v1143_v6 }
  0x82   :  { %v1005_v26 = vpop.permute.xlu0 %1004 }
  0x83   :  { %v1007_v27 = vunpack.i.h.bf16 %v1005_v26  ;;  %v1006_v28 = vunpack.i.l.bf16 %v1005_v26 }
  0x85   :  { %v53_v29 = vsel %vm51_vm0, 0.0, %v1007_v27  ;;  %v52_v30 = vsel %vm51_vm0, 0.0, %v1006_v28 }
  0x86   :  { %v56_v31 = vsel %vm54_vm1, %v53_v29, 0.0  ;;  %v55_v32 = vsel %vm54_vm1, %v52_v30, 0.0  ;;  %v1010_v33 = vpop.permute.xlu0 %1009 }
  0x87   :  { %v59_v34 = vsel %vm57_vm2, %v56_v31, 0.0  ;;  %v58_v35 = vsel %vm57_vm2, %v55_v32, 0.0  ;;  %v1012_v36 = vunpack.i.h.bf16 %v1010_v33  ;;  %v1011_v37 = vunpack.i.l.bf16 %v1010_v33 }
  0x89   :  { %v65_v41 = vsel %vm63_vm4, %v1012_v36, 0.0  ;;  %v61_v42 = vsel %vm60_vm3, %v58_v35, %v1011_v37  ;;  %v62_v43 = vsel %vm60_vm3, %v59_v34, %v1012_v36  ;;  %v64_v44 = vsel %vm63_vm4, %v1011_v37, 0.0 }
  0x8a   :  { %v75_v45 = vrot.slane %v65_v41, 7  ;;  %v1289_v46 = vrot.slane %v61_v42, 7  ;;  %v72_v47 = vrot.slane %v64_v44, 7  ;;  %v73_v48 = vrot.slane %v62_v43, 7 }
  0x8c   :  { %v86_v49 = vsel %vm70_vm5, %v75_v45, 0.0  ;;  %v74_v50 = vsel %vm70_vm5, %v1289_v46, %v73_v48  ;;  %v76_v51 = vsel %vm70_vm5, %v72_v47, %v75_v45  ;;  %v84_v52 = vsel %vm70_vm5, 0.0, %v72_v47 }
  0x8d   :  { %v100_v53 = vrot.slane %v86_v49, 1  ;;  %v95_v54 = vrot.slane %v84_v52, 1  ;;  %v121_v55 = vrot.slane %v84_v52, 2  ;;  %v83_v57 = vsel %vm70_vm5, 0.0, %v1289_v46 }
  0x8e   :  { %v119_v58 = vrot.slane %v74_v50, 2  ;;  %v122_v59 = vrot.slane %v76_v51, 2  ;;  %v85_v60 = vsel %vm70_vm5, %v73_v48, 0.0  ;;  %v118_v61 = vrot.slane %v83_v57, 2 }
  0x8f   :  { %v92_v62 = vrot.slane %v83_v57, 1  ;;  %v93_v63 = vrot.slane %v74_v50, 1  ;;  %v98_v2 = vrot.slane %v85_v60, 1  ;;  %v96_v5 = vrot.slane %v76_v51, 1 }
  0x90   :  { %v123_v4 = vsel %vm117_vm6, %v121_v55, %v122_v59  ;;  %v120_v7 = vsel %vm117_vm6, %v118_v61, %v119_v58  ;;  %v126_v10 = vrot.slane %v86_v49, 2  ;;  %v124_v13 = vrot.slane %v85_v60, 2 }
  0x91   :  { %v94_v8 = vsel %vm91_vm7, %v92_v62, %v93_v63  ;;  %v99_v9 = vsel %vm91_vm7, %v93_v63, %v98_v2  ;;  %v1023_v11 = vpack.i.bf16 %v123_v4, %v120_v7  ;;  %v97_v14 = vsel %vm91_vm7, %v95_v54, %v96_v5  ;;  %v1090_v63 = vld [vmem:[#allocation2 + $0xb8] sm:$0xff]   ;;  %v1095_v4 = vld [vmem:[#allocation2 + $0x70] sm:$0xff]  }
  0x92   :  { %v1013_v12 = vpack.i.bf16 %v99_v9, %v94_v8  ;;  %v101_v15 = vsel %vm91_vm7, %v96_v5, %v100_v53  ;;  %v915_v16 = vpack.c.bf16 %v74_v50, %v1289_v46  ;;  %v125_v18 = vsel %vm117_vm6, %v119_v58, %v124_v13  ;;  %v885_v50 = vld [vmem:[%s1405_s3] ss:$0 sm:$0xff]  ;;  %v1092_v2 = vld [vmem:[#allocation2 + $0x78] sm:$0xff]   ;;  %v1091_v5 = vld [vmem:[#allocation2 + $0xb0] sm:$0xff]  }
  0x93   :  { %1024 = vrot.lane.b32.xlu0 %v1023_v11, %s1144_s1  ;;  %v1018_v17 = vpack.i.bf16 %v101_v15, %v97_v14  ;;  %v127_v19 = vsel %vm117_vm6, %v122_v59, %v126_v10  ;;  %973 = vmatprep.subr.bf16.mxu0 %v1092_v2  ;;  %v1096_v7 = vld [vmem:[#allocation2 + $0x30] sm:$0xff]   ;;  %v1098_v8 = vld [vmem:[#allocation2 + $0x68] sm:$0xff]   ;;  %v1101_v11 = vld [vmem:[#allocation2 + $0x60] sm:$0xff]  }
  0x94   :  { %1014 = vrot.lane.b32.xlu1 %v1013_v12, %s1145_s8  ;;  %v1028_v20 = vpack.i.bf16 %v127_v19, %v125_v18  ;;  %v1094_v9 = vld [vmem:[#allocation2 + $0xa8] sm:$0xff]   ;;  %v1097_v12 = vld [vmem:[#allocation2 + $0xa0] sm:$0xff]   ;;  %v1104_v14 = vld [vmem:[#allocation2 + $0x58] sm:$0xff]  }
  0x95   :  { %v1099_v10 = vld [vmem:[#allocation2 + $0x28] sm:$0xff]   ;;  %v1102_v13 = vld [vmem:[#allocation2 + $0x20] sm:$0xff]   ;;  %v1100_v15 = vld [vmem:[#allocation2 + $0x98] sm:$0xff]  }
  0x96   :  { %v1103_v18 = vld [vmem:[#allocation2 + $0x90] sm:$0xff]   ;;  %v1116_v2 = vld [vmem:[#allocation2 + $0xc0] sm:$0xff]  }
  0x97   :  { %v1108_v19 = vld [vmem:[#allocation2 + $0x10] sm:$0xff]  }
  0x98   :  { %1019 = vrot.lane.b32.xlu1 %v1018_v17, %s1145_s8  ;;  %v1107_v17 = vld [vmem:[#allocation2 + $0x50] sm:$0xff]  }
  0x9c   :  { %1029 = vrot.lane.b32.xlu1 %v1028_v20, %s1144_s1  ;;  %v1106_v20 = vld [vmem:[#allocation2 + $0x88] sm:$0xff]  }
 0x105   :  { %v1025_v26 = vpop.permute.xlu0 %1024 }
 0x106   :  { %v1015_v21 = vpop.permute.xlu1 %1014  ;;  %v1027_v32 = vunpack.i.h.bf16 %v1025_v26  ;;  %v1026_v33 = vunpack.i.l.bf16 %v1025_v26  ;;  %v1112_v26 = vld [vmem:[#allocation2 + $0xd0] sm:$0xff]  }
 0x107   :  { %v1017_v22 = vunpack.i.h.bf16 %v1015_v21  ;;  %v1016_v23 = vunpack.i.l.bf16 %v1015_v21  ;;  %v1109_v21 = vld [vmem:[#allocation2 + $0x80] sm:$0xff]  }
 0x108   :  { %v137_v39 = vsel %vm136_vm12, %v1026_v33, %v1027_v32 }
 0x109   :  { %v143_v24 = vsel %vm110_vm8, %v84_v52, %v1016_v23  ;;  %v144_v25 = vsel %vm110_vm8, %v76_v51, %v1017_v22 }
 0x10a   :  { %v1020_v27 = vpop.permute.xlu1 %1019  ;;  %v148_v28 = vpack.c.bf16 %v144_v25, %v143_v24  ;;  %v1110_v24 = vld [vmem:[#allocation2 + $0x48] sm:$0xff]  }
 0x10b   :  { %v1021_v30 = vunpack.i.l.bf16 %v1020_v27  ;;  %v1022_v31 = vunpack.i.h.bf16 %v1020_v27  ;;  %v1111_v25 = vld [vmem:[#allocation2 + $0x8] sm:$0xff]  }
 0x10c   :  { %410 = vmatprep.mubr.bf16.mxu0 %v148_v28 }
 0x10d   :  { %916 = vmatmul.mubr.msk.bf16.vlgmr.msra.gmra.mxu0 %vm1324_vm11, %v915_v16  ;;  %v111_v34 = vsel %vm110_vm8, %v1016_v23, %v1021_v30  ;;  %v112_v38 = vsel %vm110_vm8, %v1017_v22, %v1022_v31  ;;  %v1105_v16 = vld [vmem:[#allocation2 + $0x18] sm:$0xff]  }
 0x10e   :  { %v1030_v35 = vpop.permute.xlu1 %1029  ;;  %v145_v41 = vsel %vm136_vm12, %v111_v34, %v1026_v33  ;;  %974 = vmatpush3.bf16.msra.mxu0 %v1093_v3 }
 0x10f   :  { %v1032_v36 = vunpack.i.h.bf16 %v1030_v35  ;;  %v1031_v37 = vunpack.i.l.bf16 %v1030_v35  ;;  %975 = vmatprep.subr.bf16.mxu0 %v1095_v4 }
 0x111   :  { %v138_v40 = vsel %vm136_vm12, %v1031_v37, %v1032_v36  ;;  %v146_v42 = vsel %vm136_vm12, %v112_v38, %v1031_v37 }
 0x112   :  { %v150_v43 = vpack.c.bf16 %v138_v40, %v137_v39  ;;  %v149_v44 = vpack.c.bf16 %v146_v42, %v145_v41  ;;  %976 = vmatpush3.bf16.msra.mxu0 %v1096_v7 }
 0x113   :  { %977 = vmatprep.subr.bf16.mxu0 %v1098_v8 }
 0x114   :  { %917 = vmatprep.mubr.msk.bf16.mxu1 %vm374_vm13, %v150_v43 }
 0x115   :  { %452 = vmatmul.mubr.bf16.vlgmr.msra.gmra.mxu1 %v149_v44 }
 0x116   :  { %834 = vmatpush1.bf16.msra.mxu1 %v1090_v63  ;;  %978 = vmatpush3.bf16.msra.mxu0 %v1099_v10 }
 0x117   :  { %835 = vmatprep.subr.bf16.mxu1 %v1143_v6  ;;  %979 = vmatprep.subr.bf16.mxu0 %v1101_v11 }
 0x11a   :  { %836 = vmatpush1.bf16.msra.mxu1 %v1091_v5  ;;  %980 = vmatpush3.bf16.msra.mxu0 %v1102_v13 }
 0x11b   :  { %837 = vmatprep.subr.bf16.mxu1 %v1143_v6  ;;  %981 = vmatprep.subr.bf16.mxu0 %v1104_v14 }
 0x11e   :  { %838 = vmatpush1.bf16.msra.mxu1 %v1094_v9  ;;  %982 = vmatpush3.bf16.msra.mxu0 %v1105_v16 }
 0x11f   :  { %839 = vmatprep.subr.bf16.mxu1 %v1143_v6  ;;  %983 = vmatprep.subr.bf16.mxu0 %v1107_v17 }
 0x122   :  { %840 = vmatpush1.bf16.msra.mxu1 %v1097_v12  ;;  %984 = vmatpush3.bf16.msra.mxu0 %v1108_v19 }
 0x123   :  { %841 = vmatprep.subr.bf16.mxu1 %v1143_v6  ;;  %985 = vmatprep.subr.bf16.mxu0 %v1110_v24 }
 0x126   :  { %842 = vmatpush1.bf16.msra.mxu1 %v1100_v15  ;;  %986 = vmatpush3.bf16.msra.mxu0 %v1111_v25 }
 0x127   :  { %843 = vmatprep.subr.bf16.mxu1 %v1143_v6 }
 0x12a   :  { %844 = vmatpush1.bf16.msra.mxu1 %v1103_v18 }
 0x12b   :  { %845 = vmatprep.subr.bf16.mxu1 %v1143_v6 }
 0x12e   :  { %846 = vmatpush1.bf16.msra.mxu1 %v1106_v20 }
 0x12f   :  { %847 = vmatprep.subr.bf16.mxu1 %v1143_v6 }
 0x132   :  { %848 = vmatpush1.bf16.msra.mxu1 %v1109_v21 }
 0x133   :  { %859 = vmatprep.subr.bf16.mxu1 %v1143_v6 }
 0x136   :  { %860 = vmatpush2.bf16.msra.mxu1 %v1112_v26 }
 0x137   :  { %861 = vmatprep.subr.bf16.mxu1 %v1143_v6 }
 0x1cd   :  { %v967_v45 = vpop.f32.mrf.mxu0 }
 0x1cf   :  { %v968_v46 = vpop.f32.mrf.mxu0 }
 0x1d0   :  { %v969_v48 = vadd.f32 %v968_v46, %v967_v45  ;;  %v1113_v46 = vld [vmem:[#allocation2 + $0x40] sm:$0xff]  }
 0x1d1   :  { %v970_v47 = vpop.f32.mrf.mxu0  ;;  %987 = vmatprep.subr.bf16.mxu0 %v1113_v46 }
 0x1d2   :  { %v413_v53 = vadd.f32 %v969_v48, %v885_v50 }
 0x1d3   :  { %v971_v49 = vpop.f32.mrf.mxu0 }
 0x1d4   :  { %v972_v51 = vadd.f32 %v971_v49, %v970_v47  ;;  %v1114_v49 = vld [vmem:[#allocation2] sm:$0xff]  }
 0x1d5   :  { %v453_v52 = vpop.f32.mrf.mxu1  ;;  %988 = vmatpush3.bf16.msra.mxu0 %v1114_v49 }
 0x1d6   :  { %v454_v55 = vadd.f32 %v453_v52, %v413_v53  ;;  %v416_v56 = vadd.f32 %v972_v51, %v885_v50  ;;  %v1115_v50 = vld [vmem:[#allocation2 + $0xc8] sm:$0xff]  }
 0x1d7   :  { %v455_v54 = vpop.f32.mrf.mxu1  ;;  %862 = vmatpush2.bf16.msra.mxu1 %v1115_v50 }
 0x1d8   :  { %v460_v60 = vmax.f32 %v454_v55, 0.0  ;;  %863 = vmatprep.subr.bf16.mxu1 %v1143_v6 }
 0x1d9   :  { %v456_v57 = vpop.f32.mrf.mxu1 }
 0x1da   :  { %v457_v58 = vadd.f32 %v456_v57, %v416_v56 }
 0x1db   :  { %v458_v59 = vpop.f32.mrf.mxu1  ;;  %864 = vmatpush2.bf16.msra.mxu1 %v1116_v2 }
 0x1dc   :  { %v461_v61 = vmax.f32 %v457_v58, 0.0 }
 0x1de   :  { %v1038_v62 = vpack.i.bf16 %v461_v61, %v460_v60 }
 0x1e0   :  { %1039 = vrot.lane.b32.xlu1 %v1038_v62, %s1142_s29  ;;  %1034 = vrot.lane.b32.xlu0 %v1038_v62, %s1141_s22 }
 0x252   :  { %v1040_v22 = vpop.permute.xlu1 %1039  ;;  %v1035_v23 = vpop.permute.xlu0 %1034 }
 0x253   :  { %v1042_v27 = vunpack.i.h.bf16 %v1040_v22  ;;  %v1041_v28 = vunpack.i.l.bf16 %v1040_v22  ;;  %v1037_v30 = vunpack.i.h.bf16 %v1035_v23  ;;  %v1036_v31 = vunpack.i.l.bf16 %v1035_v23 }
 0x255   :  { %v485_v32 = vsel %vm63_vm4, %v1042_v27, 0.0  ;;  %v484_v33 = vsel %vm63_vm4, %v1041_v28, 0.0  ;;  %v477_v34 = vsel %vm51_vm0, 0.0, %v1037_v30  ;;  %v476_v35 = vsel %vm51_vm0, 0.0, %v1036_v31 }
 0x256   :  { %v494_v36 = vrot.slane %v485_v32, 7  ;;  %v491_v37 = vrot.slane %v484_v33, 7  ;;  %v479_v38 = vsel %vm54_vm1, %v477_v34, 0.0  ;;  %v478_v39 = vsel %vm54_vm1, %v476_v35, 0.0 }
 0x257   :  { %v481_v40 = vsel %vm57_vm2, %v479_v38, 0.0  ;;  %v480_v41 = vsel %vm57_vm2, %v478_v39, 0.0 }
 0x258   :  { %v505_v42 = vsel %vm70_vm5, %v494_v36, 0.0  ;;  %v495_v43 = vsel %vm70_vm5, %v491_v37, %v494_v36  ;;  %v503_v44 = vsel %vm70_vm5, 0.0, %v491_v37  ;;  %v483_v45 = vsel %vm60_vm3, %v481_v40, %v1042_v27 }
 0x259   :  { %v518_v47 = vrot.slane %v505_v42, 1  ;;  %v513_v48 = vrot.slane %v503_v44, 1  ;;  %v492_v51 = vrot.slane %v483_v45, 7  ;;  %v482_v52 = vsel %vm60_vm3, %v480_v41, %v1041_v28  ;;  %v918_v45 = vld [vmem:[%s1406_s4] ss:$0 sm:$0xff] }
 0x25a   :  { %v514_v53 = vrot.slane %v495_v43, 1  ;;  %v542_v54 = vrot.slane %v505_v42, 2  ;;  %v490_v55 = vrot.slane %v482_v52, 7  ;;  %v538_v59 = vrot.slane %v495_v43, 2 }
 0x25b   :  { %v504_v56 = vsel %vm70_vm5, %v492_v51, 0.0  ;;  %v537_v8 = vrot.slane %v503_v44, 2 }
 0x25c   :  { %v515_v57 = vsel %vm91_vm7, %v513_v48, %v514_v53  ;;  %v519_v58 = vsel %vm91_vm7, %v514_v53, %v518_v47  ;;  %v493_v61 = vsel %vm70_vm5, %v490_v55, %v492_v51  ;;  %v502_v62 = vsel %vm70_vm5, 0.0, %v490_v55 }
 0x25d   :  { %v1048_v60 = vpack.i.bf16 %v519_v58, %v515_v57  ;;  %v516_v63 = vrot.slane %v504_v56, 1  ;;  %v510_v3 = vrot.slane %v502_v62, 1  ;;  %v511_v4 = vrot.slane %v493_v61, 1 }
 0x25e   :  { %v535_v5 = vrot.slane %v493_v61, 2  ;;  %v540_v7 = vrot.slane %v504_v56, 2  ;;  %v534_v9 = vrot.slane %v502_v62, 2  ;;  %v948_v10 = vpack.c.bf16 %v493_v61, %v490_v55 }
 0x25f   :  { %1049 = vrot.lane.b32.xlu1 %v1048_v60, %s1145_s8  ;;  %v512_v11 = vsel %vm91_vm7, %v510_v3, %v511_v4  ;;  %v517_v6 = vsel %vm91_vm7, %v511_v4, %v516_v63  ;;  %v543_v13 = vsel %vm117_vm6, %v538_v59, %v542_v54  ;;  %v539_v17 = vsel %vm117_vm6, %v537_v8, %v538_v59 }
 0x260   :  { %v541_v12 = vsel %vm117_vm6, %v535_v5, %v540_v7  ;;  %v1043_v14 = vpack.i.bf16 %v517_v6, %v512_v11  ;;  %v536_v16 = vsel %vm117_vm6, %v534_v9, %v535_v5 }
 0x261   :  { %v1058_v15 = vpack.i.bf16 %v543_v13, %v541_v12  ;;  %v1053_v18 = vpack.i.bf16 %v539_v17, %v536_v16 }
 0x262   :  { %1044 = vrot.lane.b32.xlu0 %v1043_v14, %s1145_s8 }
 0x263   :  { %1059 = vrot.lane.b32.xlu1 %v1058_v15, %s1144_s1 }
 0x266   :  { %1054 = vrot.lane.b32.xlu0 %v1053_v18, %s1144_s1 }
 0x2d1   :  { %v1050_v19 = vpop.permute.xlu1 %1049 }
 0x2d2   :  { %v1052_v24 = vunpack.i.h.bf16 %v1050_v19  ;;  %v1051_v28 = vunpack.i.l.bf16 %v1050_v19 }
 0x2d4   :  { %v1045_v20 = vpop.permute.xlu0 %1044 }
 0x2d5   :  { %v1060_v21 = vpop.permute.xlu1 %1059  ;;  %v1047_v22 = vunpack.i.h.bf16 %v1045_v20  ;;  %v1046_v23 = vunpack.i.l.bf16 %v1045_v20 }
 0x2d6   :  { %v1062_v25 = vunpack.i.h.bf16 %v1060_v21  ;;  %v1061_v26 = vunpack.i.l.bf16 %v1060_v21 }
 0x2d7   :  { %v558_v27 = vsel %vm110_vm8, %v503_v44, %v1046_v23  ;;  %v529_v30 = vsel %vm110_vm8, %v1047_v22, %v1052_v24  ;;  %v559_v32 = vsel %vm110_vm8, %v495_v43, %v1047_v22  ;;  %v528_v36 = vsel %vm110_vm8, %v1046_v23, %v1051_v28 }
 0x2d8   :  { %v1055_v31 = vpop.permute.xlu0 %1054  ;;  %v563_v35 = vpack.c.bf16 %v559_v32, %v558_v27  ;;  %v553_v37 = vsel %vm136_vm12, %v1061_v26, %v1062_v25  ;;  %v561_v38 = vsel %vm136_vm12, %v529_v30, %v1061_v26 }
 0x2d9   :  { %v1057_v33 = vunpack.i.h.bf16 %v1055_v31  ;;  %v1056_v34 = vunpack.i.l.bf16 %v1055_v31 }
 0x2da   :  { %824 = vmatprep.mubr.bf16.mxu0 %v563_v35 }
 0x2db   :  { %v552_v39 = vsel %vm136_vm12, %v1056_v34, %v1057_v33  ;;  %v560_v40 = vsel %vm136_vm12, %v528_v36, %v1056_v34  ;;  %949 = vmatmul.mubr.msk.bf16.vlgmr.msra.gmra.mxu0 %vm1324_vm11, %v948_v10 }
 0x2dc   :  { %v564_v41 = vpack.c.bf16 %v561_v38, %v560_v40  ;;  %v565_v42 = vpack.c.bf16 %v553_v37, %v552_v39 }
 0x2de   :  { %950 = vmatprep.mubr.msk.bf16.mxu1 %vm374_vm13, %v565_v42 }
 0x2df   :  { %866 = vmatmul.mubr.bf16.vlgmr.msra.gmra.mxu1 %v564_v41 }
 0x39b   :  { %v989_v43 = vpop.f32.mrf.mxu0 }
 0x39d   :  { %v990_v44 = vpop.f32.mrf.mxu0 }
 0x39e   :  { %v991_v46 = vadd.f32 %v990_v44, %v989_v43 }
 0x39f   :  { %v867_v47 = vpop.f32.mrf.mxu1  ;;  %v992_v48 = vpop.f32.mrf.mxu0 }
 0x3a0   :  { %v827_v49 = vadd.f32 %v991_v46, %v918_v45 }
 0x3a1   :  { %v869_v50 = vpop.f32.mrf.mxu1  ;;  %v993_v51 = vpop.f32.mrf.mxu0 }
 0x3a2   :  { %v868_v52 = vadd.f32 %v867_v47, %v827_v49  ;;  %v994_v53 = vadd.f32 %v993_v51, %v992_v48 }
 0x3a3   :  { %v870_v54 = vpop.f32.mrf.mxu1 }
 0x3a4   :  { %v874_v29 = vadd.f32 %v868_v52, %v1184_v0  ;;  %v830_v55 = vadd.f32 %v994_v53, %v918_v45 }
 0x3a5   :  { %v872_v56 = vpop.f32.mrf.mxu1 }
 0x3a6   :  { %v876_v57 = vmax.f32 %v874_v29, 0.0  ;;  %v871_v58 = vadd.f32 %v870_v54, %v830_v55 }
 0x3a8   :  { %878 = vst [vmem:[%s1407_s5] sm:$0xff] %v876_v57  ;;  %v875_v59 = vadd.f32 %v871_v58, %v1189_v1 }
 0x3aa   :  { %v877_v60 = vmax.f32 %v875_v59, 0.0 }
 0x3ac   :  { %879 = vst [vmem:[%s1407_s5 + $0x8] sm:$0xff] %v877_v60 }
 0x3ad   :  { %884 = vsyncpa [#allocation3], 1 }

</bundles_post_ra>
